<compile_context>
chip_gen: v7x
topology: tpu7x:2x2x1
jax: 0.10.0
libtpu: 0.0.40
codegen_flags: <defaults>
</compile_context>

<pallas_src>
import functools

import jax
import jax.numpy as jnp
import numpy as np
from jax import lax
from jax.experimental import pallas as pl
from jax.experimental.pallas import tpu as pltpu


def compute_kernel_sizes(s, num_layers):
    """Square kernel sizes (stride 1, VALID) so s x s collapses to 1 x 1:
    sum_i (k_i - 1) == s - 1."""
    total = s - 1
    base, rem = divmod(total, num_layers)
    return [base + 1 + (1 if i < rem else 0) for i in range(num_layers)]


def _round_up(v, m):
    return ((v + m - 1) // m) * m


# ----------------------------------------------------------------------------
# Setup-time parameter folding (runs ONCE per parameter set, not per forward).
# ----------------------------------------------------------------------------
def _conv_stack(x, params):
    """The three convs + biases (no sigmoid), NCHW, PyTorch OIHW weights."""
    out = x
    for (w, b) in params:
        out = lax.conv_general_dilated(
            out, w, window_strides=(1, 1), padding="VALID",
            dimension_numbers=("NCHW", "OIHW", "NCHW"),
            precision=lax.Precision.HIGHEST)
        out = out + b[None, :, None, None]
    return out  # (N, O3, 1, 1)


def fold_params(params, s, spectral_bands):
    """Collapse the activation-free conv stack into a single (W_fold, b_fold):
    conv_stack(x) == x.reshape(B, Cin*s*s) @ W_fold + b_fold  (exact, linearity).
    Only valid while the module has NO inter-layer nonlinearity/normalization."""
    cin = spectral_bands
    K = cin * s * s
    zero = jnp.zeros((1, cin, s, s), jnp.float32)
    b_fold = _conv_stack(zero, params)[0, :, 0, 0]                     # (O3,)
    eye = jnp.eye(K, dtype=jnp.float32).reshape(K, cin, s, s)
    w_fold = _conv_stack(eye, params)[:, :, 0, 0] - b_fold[None, :]    # (K, O3)
    return w_fold, b_fold


# ----------------------------------------------------------------------------
# Pallas kernel: one streaming matmul + bias + sigmoid per batch tile.
# ----------------------------------------------------------------------------
def _make_kernel(approx_recip):
    def kernel(x_ref, w_ref, b_ref, o_ref):
        # x streams in its native dtype; cast to the (bf16) weight dtype here
        # so the wrapper never makes an extra HBM pass over x.
        x = x_ref[...].astype(w_ref.dtype)
        logits = jnp.dot(x, w_ref[...], preferred_element_type=jnp.float32)
        logits = logits + b_ref[...]
        # exp + reciprocal both ride the EUP slot (off the VALU/store path).
        o_ref[...] = pl.reciprocal(1.0 + jnp.exp(-logits),
                                   approx=approx_recip).astype(o_ref.dtype)
    return kernel


@functools.partial(jax.jit, static_argnames=("compute_dtype", "block_b"))
def local_sensing_forward(x_nchw, w_fold, b_fold, *,
                          compute_dtype=jnp.bfloat16, block_b=1024):
    """x_nchw: (B, spectral_bands, s, s); (w_fold, b_fold) from fold_params.

    Returns the PyTorch-shaped output (B, ld//4, 1, 1) in float32.
    """
    B, C, H, W = x_nchw.shape
    assert H == W, "neighborhood window must be square"
    K = C * H * W
    O3 = int(w_fold.shape[1])

    # Metadata-only reshape; no dtype change, no padding pass over x.
    x_flat = x_nchw.reshape(B, K)

    # Tiny resident operands.
    w_c = w_fold.astype(compute_dtype)
    b_c = b_fold.reshape(1, O3).astype(jnp.float32)

    # Batch tile: whole batch if it fits the cap (full-dim block is always
    # legal), else block_b rounded to a multiple of 16 (bf16 sublane pack).
    # The last block may be ragged; Pallas masks the out-of-bounds rows and
    # the output already has exactly B rows, so no wrapper-side slice/pad.
    if B <= block_b:
        Bt = B
    else:
        Bt = _round_up(min(block_b, B), 16)
    grid = (pl.cdiv(B, Bt),)

    x_itemsize = jnp.dtype(x_flat.dtype).itemsize
    w_itemsize = jnp.dtype(compute_dtype).itemsize
    cost = pl.CostEstimate(
        flops=2 * B * K * O3,
        transcendentals=B * O3,
        bytes_accessed=B * K * x_itemsize + K * O3 * w_itemsize + B * O3 * 4)

    kernel = _make_kernel(
        approx_recip=(jnp.dtype(compute_dtype) != jnp.dtype(jnp.float32)))

    out = pl.pallas_call(
        kernel,
        out_shape=jax.ShapeDtypeStruct((B, O3), jnp.float32),
        grid=grid,
        in_specs=[
            pl.BlockSpec((Bt, K), lambda i: (i, 0)),   # streaming batch tile of windows
            pl.BlockSpec((K, O3), lambda i: (0, 0)),   # resident folded weights
            pl.BlockSpec((1, O3), lambda i: (0, 0)),   # resident folded bias
        ],
        out_specs=pl.BlockSpec((Bt, O3), lambda i: (i, 0)),
        compiler_params=pltpu.CompilerParams(
            # "parallel" lets v7x split batch tiles over its 2 TensorCores;
            # on v5e/v6e (1 TC) it is simply a sequential loop.
            dimension_semantics=("parallel",)),
        cost_estimate=cost,
    )(x_flat, w_c, b_c)

    return out[:, :, None, None]          # (B, ld//4, 1, 1) — PyTorch NCHW output


# ----------------------------------------------------------------------------
# Pure-JAX reference (matches the PyTorch module layer by layer).
# ----------------------------------------------------------------------------
def reference_forward(x_nchw, params):
    return jax.nn.sigmoid(_conv_stack(x_nchw, params))


if __name__ == "__main__":
    # Window s=7, latent dim ld=32 (-> ld//4 = 8 outputs), 8 spectral bands,
    # 3 layers ==> kernel sizes [3, 3, 3], spatial 7 -> 5 -> 3 -> 1.
    s, ld, spectral_bands, num_layers = 7, 32, 8, 3
    batch = 300            # non-multiple of the tile: exercises the ragged last block
    ks = compute_kernel_sizes(s, num_layers)

    key = jax.random.PRNGKey(0)

    # Deterministic parameter init (PyTorch Conv2d-style uniform bounds).
    params = []
    cin = spectral_bands
    for i, k in enumerate(ks):
        cout = ld if i < num_layers - 1 else ld // 4
        key, kw, kb = jax.random.split(key, 3)
        bound = 1.0 / np.sqrt(cin * k * k)
        w = jax.random.uniform(kw, (cout, cin, k, k), jnp.float32, -bound, bound)
        b = jax.random.uniform(kb, (cout,), jnp.float32, -bound, bound)
        params.append((w, b))
        cin = cout

    key, kx = jax.random.split(key)
    x = jax.random.normal(kx, (batch, spectral_bands, s, s), jnp.float32)

    ref = jax.block_until_ready(reference_forward(x, params))

    # Setup-time folding, hoisted: once per parameter set, outside the forward.
    w_fold, b_fold = fold_params(params, s, spectral_bands)
    w_fold, b_fold = jax.block_until_ready((w_fold, b_fold))

    # Tight pure-JAX guard that the folding (no inter-layer activation) holds.
    folded_ref = jax.nn.sigmoid(
        jnp.dot(x.reshape(batch, -1), w_fold,
                precision=lax.Precision.HIGHEST) + b_fold[None, :])
    np.testing.assert_allclose(np.asarray(folded_ref)[:, :, None, None],
                               np.asarray(ref), rtol=1e-4, atol=1e-5)

    # Fast path: bf16 operands (cast in-kernel), f32 accumulate, approx recip.
    # block_b=128 -> grid=(3,) with a ragged 44-row last block (no jnp.pad).
    out_bf16 = jax.block_until_ready(
        local_sensing_forward(x, w_fold, b_fold,
                              compute_dtype=jnp.bfloat16, block_b=128))
    assert out_bf16.shape == (batch, ld // 4, 1, 1), out_bf16.shape
    np.testing.assert_allclose(np.asarray(out_bf16), np.asarray(ref),
                               rtol=2e-2, atol=5e-3)

    # f32 path (default block_b -> single resident block, exact reciprocal):
    # checks the folded Pallas kernel against the layered reference.
    out_f32 = jax.block_until_ready(
        local_sensing_forward(x, w_fold, b_fold, compute_dtype=jnp.float32))
    np.testing.assert_allclose(np.asarray(out_f32), np.asarray(ref),
                               rtol=5e-3, atol=1e-3)

    print("KERNEL_OK")
</pallas_src>

<mosaic_0001>
module attributes {stable_mosaic.version = 11 : i64} {
  func.func @kernel(%arg0: i32, %arg1: memref<128x392xf32, #tpu.memory_space<vmem>>, %arg2: memref<392x8xbf16, #tpu.memory_space<vmem>>, %arg3: memref<1x8xf32, #tpu.memory_space<vmem>>, %arg4: memref<128x8xf32, #tpu.memory_space<vmem>>) attributes {dimension_semantics = [#tpu.dimension_semantics<parallel>], iteration_bounds = array<i64: 3>, scalar_prefetch = 0 : i64, scratch_operands = 0 : i64, tpu.core_type = #tpu.core_type<tc>, window_params = [{transform_indices = @transform_0, window_bounds = array<i64: 128, 392>}, {pipeline_mode = #tpu.pipeline_mode<synchronous>, transform_indices = @transform_1, window_bounds = array<i64: 392, 8>}, {pipeline_mode = #tpu.pipeline_mode<synchronous>, transform_indices = @transform_2, window_bounds = array<i64: 1, 8>}, {transform_indices = @transform_3, window_bounds = array<i64: 128, 8>}]} {
    %c0 = arith.constant 0 : index
    %c0_0 = arith.constant 0 : index
    %0 = vector.load %arg1[%c0, %c0_0] : memref<128x392xf32, #tpu.memory_space<vmem>>, vector<128x392xf32>
    %1 = arith.truncf %0 : vector<128x392xf32> to vector<128x392xbf16>
    %c0_1 = arith.constant 0 : index
    %c0_2 = arith.constant 0 : index
    %2 = vector.load %arg2[%c0_1, %c0_2] : memref<392x8xbf16, #tpu.memory_space<vmem>>, vector<392x8xbf16>
    %cst = arith.constant dense<0.000000e+00> : vector<128x8xf32>
    %3 = tpu.matmul %1, %2, %cst {dimension_numbers = #tpu.dot_dimension_numbers<[1], [0], [0], [1], [0, 0, 1, 1], [], []>} : vector<128x392xbf16>, vector<392x8xbf16>, vector<128x8xf32> -> vector<128x8xf32>
    %c0_3 = arith.constant 0 : index
    %c0_4 = arith.constant 0 : index
    %4 = vector.load %arg3[%c0_3, %c0_4] : memref<1x8xf32, #tpu.memory_space<vmem>>, vector<1x8xf32>
    %5 = vector.broadcast %4 : vector<1x8xf32> to vector<128x8xf32>
    %6 = arith.addf %3, %5 : vector<128x8xf32>
    %cst_5 = arith.constant 0.000000e+00 : f32
    %7 = vector.broadcast %cst_5 : f32 to vector<128x8xf32>
    %8 = arith.subf %7, %6 : vector<128x8xf32>
    %9 = math.exp %8 : vector<128x8xf32>
    %cst_6 = arith.constant 1.000000e+00 : f32
    %10 = vector.broadcast %cst_6 : f32 to vector<128x8xf32>
    %11 = arith.addf %10, %9 : vector<128x8xf32>
    %12 = tpu.reciprocal %11 {approx = true} : vector<128x8xf32> -> vector<128x8xf32>
    %c0_7 = arith.constant 0 : index
    %c0_8 = arith.constant 0 : index
    %13 = vector.load %arg4[%c0_7, %c0_8] : memref<128x8xf32, #tpu.memory_space<vmem>>, vector<128x8xf32>
    tpu.vector_store %arg4[%c0_7, %c0_8], %12 {strides = array<i32>} : memref<128x8xf32, #tpu.memory_space<vmem>>, vector<128x8xf32>,
    return
  }
  func.func @transform_0(%arg0: i32) -> (i32, i32) {
    %c0_i32 = arith.constant 0 : i32
    %c0_i32_0 = arith.constant 0 : i32
    return %arg0, %c0_i32 : i32, i32
  }
  func.func @transform_1(%arg0: i32) -> (i32, i32) {
    %c0_i32 = arith.constant 0 : i32
    %c0_i32_0 = arith.constant 0 : i32
    %c0_i32_1 = arith.constant 0 : i32
    return %c0_i32, %c0_i32_0 : i32, i32
  }
  func.func @transform_2(%arg0: i32) -> (i32, i32) {
    %c0_i32 = arith.constant 0 : i32
    %c0_i32_0 = arith.constant 0 : i32
    %c0_i32_1 = arith.constant 0 : i32
    return %c0_i32, %c0_i32_0 : i32, i32
  }
  func.func @transform_3(%arg0: i32) -> (i32, i32) {
    %c0_i32 = arith.constant 0 : i32
    %c0_i32_0 = arith.constant 0 : i32
    return %arg0, %c0_i32 : i32, i32
  }
}

</mosaic_0001>

<bundles_post_ra>
// kernel: local_sensing_forward.1
= control target key start
LH: loop header
LB: loop body
LE: loop exit
PB: predicated region body
PF: predicated region fallthrough
CT: control target
= control target key end

     0   :  { %s1508_s12 = smov 0   ;;  %s1510_s13 = smov 0   ;;  %s1859_s0 = inlined_call_operand.vmem [shape: f32[300,392], index: 0, kind: input, shape index: {}]   ;;  %s1860_s1 = inlined_call_operand.vmem [shape: bf16[392,8], index: 1, kind: input, shape index: {}]   ;;  %s1861_s2 = inlined_call_operand.vmem [shape: f32[1,8], index: 2, kind: input, shape index: {}]   ;;  %s1862_s3 = inlined_call_operand.vmem [shape: f32[300,8], index: 3, kind: output, shape index: {}]  }
   0x1   :  { %s1512_s14 = smov 0  }
   0x2 LB: > { %s1521_s15 = sadd.s32 4294967295, %s1453_s14   ;;  %s1523_s16 = sadd.s32 1, %s1453_s14   ;;  %s1453_s14 = sphi %s1512_s14, %s1869_s14   ;;  %s1449_s13 = sphi %s1510_s13, %s1868_s13   ;;  %s1445_s12 = sphi %s1508_s12, %s1867_s12  }
   0x3   : > { %s85_s17 = ssub.s32 %s1453_s14, %s1523_s16  ;;  %s88_s18 = sadd.s32 1, %s1449_s13 }
   0x4   : > { %p86_p0 = scmp.eq.s32.totalorder %s85_s17, 0  ;;  %p98_p1 = scmp.ne.s32.totalorder %s1449_s13, %s1445_s12 }
   0x5   : > { %p99_p2 = scmp.eq.s32.totalorder %s1521_s15, 2  ;;  %p1097_p3 = scmp.ge.s32.totalorder %s1453_s14, 1 }
   0x6   : > { %s1531_s19 = scalar_select %p86_p0, %s1449_s13, %s88_s18  }
   0x7   : > { %p1533_p4 = por %p99_p2, %p98_p1  ;;  %p149_p5 = scmp.lt.s32.totalorder %s1453_s14, 4 }
   0x9   : > { %p150_p6 = pnand %p1097_p3, %p149_p5 }
   0xa   : > { %v1310_v0 = vld [vmem:[%s1860_s1 + $0x40] sm:$0xff] (!%p150_p6)   ;;  %v1487_v1 = vmov (!%p150_p6), 0   ;;  %v1313_v4 = vld [vmem:[%s1860_s1 + $0x48] sm:$0xff] (!%p150_p6)   ;;  %v1316_v7 = vld [vmem:[%s1860_s1 + $0x50] sm:$0xff] (!%p150_p6)   ;;  %s1564_s10 = sshll.u32 (!%p150_p6), %s1521_s15, 4  ;;  %vm500_vm0 = vcmask (!%p150_p6), 64512  }
   0xb   : > { %153 = sbr.rel (%p150_p6) target bundleno = 399 (0x18f), region = 32  ;;  %626 = vmatprep.subr.bf16.mxu1 (!%p150_p6), %v1487_v1  ;;  %v1311_v2 = vld [vmem:[%s1860_s1 + $0x80] sm:$0xff] (!%p150_p6)   ;;  %1157 = vmatprep.subr.bf16.mxu0 (!%p150_p6), %v1310_v0  ;;  %v1314_v5 = vld [vmem:[%s1860_s1 + $0x88] sm:$0xff] (!%p150_p6)   ;;  %v1317_v8 = vld [vmem:[%s1860_s1 + $0x90] sm:$0xff] (!%p150_p6)   ;;  %p184_p7 = scmp.lt.s32.totalorder (!%p150_p6), %s1564_s10, 37  ;;  %vm525_vm1 = vcmask (!%p150_p6), 1043456  }
   0xc   : > { %v1312_v3 = vld [vmem:[%s1860_s1] sm:$0xff] (!%p150_p6)   ;;  %627 = vmatpush1.bf16.msra.mxu1 (!%p150_p6), %v1311_v2  ;;  %v1315_v6 = vld [vmem:[%s1860_s1 + $0x8] sm:$0xff] (!%p150_p6)   ;;  %v1318_v9 = vld [vmem:[%s1860_s1 + $0x10] sm:$0xff] (!%p150_p6)   ;;  %s175_s14 = sand.u32 (!%p150_p6), 1, %s1445_s12  }
   0xd   : > { %1158 = vmatpush3.bf16.msra.mxu0 (!%p150_p6), %v1312_v3  ;;  %628 = vmatprep.subr.bf16.mxu1 (!%p150_p6), %v1487_v1  ;;  %v1319_v10 = vld [vmem:[%s1860_s1 + $0x58] sm:$0xff] (!%p150_p6)   ;;  %v1322_v13 = vld [vmem:[%s1860_s1 + $0x60] sm:$0xff] (!%p150_p6)   ;;  %v1325_v16 = vld [vmem:[%s1860_s1 + $0x68] sm:$0xff] (!%p150_p6)   ;;  %s1098_s17 = sshll.u32 (!%p150_p6), %s175_s14, 7 }
   0xe   : > { %1159 = vmatprep.subr.bf16.mxu0 (!%p150_p6), %v1313_v4  ;;  %v1320_v11 = vld [vmem:[%s1860_s1 + $0x98] sm:$0xff] (!%p150_p6)   ;;  %v1323_v14 = vld [vmem:[%s1860_s1 + $0xa0] sm:$0xff] (!%p150_p6)   ;;  %v1326_v17 = vld [vmem:[%s1860_s1 + $0xa8] sm:$0xff] (!%p150_p6)   ;;  %s1717_s12 = scalar_lea.vmem (!%p150_p6), [#allocation2], %s1098_s17  }
   0xf   : > { %v1321_v12 = vld [vmem:[%s1860_s1 + $0x18] sm:$0xff] (!%p150_p6)   ;;  %v1324_v15 = vld [vmem:[%s1860_s1 + $0x20] sm:$0xff] (!%p150_p6)   ;;  %v1327_v18 = vld [vmem:[%s1860_s1 + $0x28] sm:$0xff] (!%p150_p6)  }
  0x10   : > { %629 = vmatpush1.bf16.msra.mxu1 (!%p150_p6), %v1314_v5  ;;  %v1328_v19 = vld [vmem:[%s1860_s1 + $0x70] sm:$0xff] (!%p150_p6)   ;;  %v1331_v24 = vld [vmem:[%s1860_s1 + $0x78] sm:$0xff] (!%p150_p6)   ;;  %v1334_v33 = vld [vmem:[%s1860_s1 + $0xc0] ss:$0 sps:$4 sm:$0xff] (!%p150_p6)  }
  0x11   : > { %1160 = vmatpush3.bf16.msra.mxu0 (!%p150_p6), %v1315_v6  ;;  %630 = vmatprep.subr.bf16.mxu1 (!%p150_p6), %v1487_v1  ;;  %v1329_v20 = vld [vmem:[%s1860_s1 + $0xb0] sm:$0xff] (!%p150_p6)   ;;  %v1332_v28 = vld [vmem:[%s1860_s1 + $0xb8] sm:$0xff] (!%p150_p6)   ;;  %v527_v39 = vsel (!%p150_p6), %vm525_vm1, %v1334_v33, 0 }
  0x12   : > { %1161 = vmatprep.subr.bf16.mxu0 %v1316_v7  ;;  %s185_s27 = scalar_select %p184_p7, %s1564_s10, 37  ;;  %v1330_v21 = vld [vmem:[%s1860_s1 + $0x30] sm:$0xff]   ;;  %v1333_v29 = vld [vmem:[%s1860_s1 + $0x38] sm:$0xff]  }
  0x13   : > { %s827_s18 = ssub.s32 (%p1533_p4), 38, %s1564_s10  ;;  %s1154_s21 = sshll.u32 (%p1533_p4), %s1521_s15, 7 }
  0x14   : > { %631 = vmatpush1.bf16.msra.mxu1 %v1317_v8  ;;  %s1153_s7 = sshll.u32 %s185_s27, 5  ;;  %p828_p8 = scmp.lt.s32.totalorder (%p1533_p4), %s827_s18, 16 }
  0x15   : > { %1162 = vmatpush3.bf16.msra.mxu0 %v1318_v9  ;;  %632 = vmatprep.subr.bf16.mxu1 %v1487_v1  ;;  %s1608_s23 = scalar_lea.vmem %s1859_s0, %s1153_s7  ;;  %s1766_s24 = scalar_lea.vmem (%p1533_p4), %s1862_s3, %s1154_s21  }
  0x16   : > { %1163 = vmatprep.subr.bf16.mxu0 %v1319_v10  ;;  %v202_v22 = vld [vmem:[%s1608_s23 + $0x8] sm:$0xff]  ;;  %v204_v26 = vld [vmem:[%s1608_s23 + $0x18] sm:$0xff]  ;;  %v201_v31 = vld [vmem:[%s1608_s23] sm:$0xff] }
  0x17   : > { %v206_v23 = vld [vmem:[%s1608_s23 + $0x28] sm:$0xff]  ;;  %v208_v27 = vld [vmem:[%s1608_s23 + $0x38] sm:$0xff]  ;;  %v205_v32 = vld [vmem:[%s1608_s23 + $0x20] sm:$0xff] }
  0x18   : > { %633 = vmatpush1.bf16.msra.mxu1 %v1320_v11  ;;  %v266_v25 = vpack.c.bf16 %v206_v23, %v202_v22  ;;  %v268_v30 = vpack.c.bf16 %v208_v27, %v204_v26  ;;  %v210_v34 = vld [vmem:[%s1608_s23 + $0x48] sm:$0xff]  ;;  %v265_v36 = vpack.c.bf16 %v205_v32, %v201_v31  ;;  %v203_v37 = vld [vmem:[%s1608_s23 + $0x10] sm:$0xff]  ;;  %v212_v41 = vld [vmem:[%s1608_s23 + $0x58] sm:$0xff] }
  0x19   : > { %1164 = vmatpush3.bf16.msra.mxu0 %v1321_v12  ;;  %634 = vmatprep.subr.bf16.mxu1 %v1487_v1  ;;  %v214_v35 = vld [vmem:[%s1608_s23 + $0x68] sm:$0xff]  ;;  %v207_v38 = vld [vmem:[%s1608_s23 + $0x30] sm:$0xff]  ;;  %v216_v42 = vld [vmem:[%s1608_s23 + $0x78] sm:$0xff] }
  0x1a   : > { %1165 = vmatprep.subr.bf16.mxu0 %v1322_v13  ;;  %561 = vmatprep.mubr.bf16.mxu0 %v266_v25  ;;  %v270_v40 = vpack.c.bf16 %v214_v35, %v210_v34  ;;  %v267_v43 = vpack.c.bf16 %v207_v38, %v203_v37  ;;  %v272_v44 = vpack.c.bf16 %v216_v42, %v212_v41  ;;  %v209_v45 = vld [vmem:[%s1608_s23 + $0x40] sm:$0xff]  ;;  %v218_v47 = vld [vmem:[%s1608_s23 + $0x88] sm:$0xff]  ;;  %v211_v50 = vld [vmem:[%s1608_s23 + $0x50] sm:$0xff] }
  0x1b   : > { %1128 = vmatprep.mubr.msk.bf16.mxu1 %vm500_vm0, %v268_v30  ;;  %v213_v46 = vld [vmem:[%s1608_s23 + $0x60] sm:$0xff]  ;;  %v222_v48 = vld [vmem:[%s1608_s23 + $0xa8] sm:$0xff]  ;;  %v215_v51 = vld [vmem:[%s1608_s23 + $0x70] sm:$0xff] }
  0x1c   : > { %635 = vmatpush1.bf16.msra.mxu1 %v1323_v14  ;;  %v269_v49 = vpack.c.bf16 %v213_v46, %v209_v45  ;;  %v274_v52 = vpack.c.bf16 %v222_v48, %v218_v47  ;;  %v220_v53 = vld [vmem:[%s1608_s23 + $0x98] sm:$0xff]  ;;  %v271_v55 = vpack.c.bf16 %v215_v51, %v211_v50  ;;  %v217_v57 = vld [vmem:[%s1608_s23 + $0x80] sm:$0xff]  ;;  %v226_v59 = vld [vmem:[%s1608_s23 + $0xc8] sm:$0xff] }
  0x1d   : > { %1166 = vmatpush3.bf16.msra.mxu0 %v1324_v15  ;;  %636 = vmatprep.subr.bf16.mxu1 %v1487_v1  ;;  %v224_v54 = vld [vmem:[%s1608_s23 + $0xb8] sm:$0xff]  ;;  %v221_v58 = vld [vmem:[%s1608_s23 + $0xa0] sm:$0xff]  ;;  %v230_v60 = vld [vmem:[%s1608_s23 + $0xe8] sm:$0xff] }
  0x1e   : > { %1167 = vmatprep.subr.bf16.mxu0 %v1325_v16  ;;  %v276_v56 = vpack.c.bf16 %v224_v54, %v220_v53  ;;  %v273_v61 = vpack.c.bf16 %v221_v58, %v217_v57  ;;  %v219_v62 = vld [vmem:[%s1608_s23 + $0x90] sm:$0xff]  ;;  %v278_v0 = vpack.c.bf16 %v230_v60, %v226_v59  ;;  %v232_v2 = vld [vmem:[%s1608_s23 + $0xf8] sm:$0xff]  ;;  %v225_v5 = vld [vmem:[%s1608_s23 + $0xc0] sm:$0xff] }
  0x1f   : > { %v223_v63 = vld [vmem:[%s1608_s23 + $0xb0] sm:$0xff]  ;;  %v229_v6 = vld [vmem:[%s1608_s23 + $0xe0] sm:$0xff]  ;;  %v234_v7 = vld [vmem:[%s1608_s23 + $0x108] sm:$0xff] }
  0x20   : > { %637 = vmatpush1.bf16.msra.mxu1 %v1326_v17  ;;  %v275_v3 = vpack.c.bf16 %v223_v63, %v219_v62  ;;  %v238_v8 = vld [vmem:[%s1608_s23 + $0x128] sm:$0xff]  ;;  %v277_v9 = vpack.c.bf16 %v229_v6, %v225_v5  ;;  %v227_v10 = vld [vmem:[%s1608_s23 + $0xd0] sm:$0xff]  ;;  %v236_v13 = vld [vmem:[%s1608_s23 + $0x118] sm:$0xff] }
  0x21   : > { %1168 = vmatpush3.bf16.msra.mxu0 %v1327_v18  ;;  %638 = vmatprep.subr.bf16.mxu1 %v1487_v1  ;;  %v231_v11 = vld [vmem:[%s1608_s23 + $0xf0] sm:$0xff]  ;;  %v282_v12 = vpack.c.bf16 %v238_v8, %v234_v7  ;;  %v240_v14 = vld [vmem:[%s1608_s23 + $0x138] sm:$0xff]  ;;  %v233_v17 = vld [vmem:[%s1608_s23 + $0x100] sm:$0xff] }
  0x22   : > { %1169 = vmatprep.subr.bf16.mxu0 %v1328_v19  ;;  %v279_v15 = vpack.c.bf16 %v231_v11, %v227_v10  ;;  %v284_v16 = vpack.c.bf16 %v240_v14, %v236_v13  ;;  %v237_v18 = vld [vmem:[%s1608_s23 + $0x120] sm:$0xff]  ;;  %v242_v19 = vld [vmem:[%s1608_s23 + $0x148] sm:$0xff]  ;;  %v235_v22 = vld [vmem:[%s1608_s23 + $0x110] sm:$0xff] }
  0x23   : > { %v239_v23 = vld [vmem:[%s1608_s23 + $0x130] sm:$0xff]  ;;  %v244_v25 = vld [vmem:[%s1608_s23 + $0x158] sm:$0xff]  ;;  %v245_v30 = vld [vmem:[%s1608_s23 + $0x160] sm:$0xff] }
  0x24   : > { %639 = vmatpush1.bf16.msra.mxu1 %v1329_v20  ;;  %v246_v20 = vld [vmem:[%s1608_s23 + $0x168] sm:$0xff]  ;;  %v248_v26 = vld [vmem:[%s1608_s23 + $0x178] sm:$0xff]  ;;  %v283_v27 = vpack.c.bf16 %v239_v23, %v235_v22  ;;  %v243_v34 = vld [vmem:[%s1608_s23 + $0x150] sm:$0xff] }
  0x25   : > { %1170 = vmatpush3.bf16.msra.mxu0 %v1330_v21  ;;  %640 = vmatprep.subr.bf16.mxu1 %v1487_v1  ;;  %v281_v21 = vpack.c.bf16 %v237_v18, %v233_v17  ;;  %v250_v31 = vld [vmem:[%s1608_s23 + $0x188] sm:$0xff]  ;;  %v247_v35 = vld [vmem:[%s1608_s23 + $0x170] sm:$0xff]  ;;  %v252_v37 = vld [vmem:[%s1608_s23 + $0x198] sm:$0xff] }
  0x26   : > { %1171 = vmatprep.subr.bf16.mxu0 %v1331_v24  ;;  %v286_v24 = vpack.c.bf16 %v246_v20, %v242_v19  ;;  %v254_v32 = vld [vmem:[%s1608_s23 + $0x1a8] sm:$0xff]  ;;  %v256_v38 = vld [vmem:[%s1608_s23 + $0x1b8] sm:$0xff]  ;;  %v249_v41 = vld [vmem:[%s1608_s23 + $0x180] sm:$0xff] }
  0x27   : > { %v253_v42 = vld [vmem:[%s1608_s23 + $0x1a0] sm:$0xff]  ;;  %v251_v46 = vld [vmem:[%s1608_s23 + $0x190] sm:$0xff]  ;;  %v264_v50 = vld [vmem:[%s1608_s23 + $0x1f8] sm:$0xff] }
  0x28   : > { %641 = vmatpush1.bf16.msra.mxu1 %v1332_v28  ;;  %v288_v28 = vpack.c.bf16 %v248_v26, %v244_v25  ;;  %v289_v45 = vpack.c.bf16 %v253_v42, %v249_v41  ;;  %v255_v47 = vld [vmem:[%s1608_s23 + $0x1b0] sm:$0xff]  ;;  %v257_v53 = vld [vmem:[%s1608_s23 + $0x1c0] sm:$0xff] }
  0x29   : > { %1172 = vmatpush3.bf16.msra.mxu0 %v1333_v29  ;;  %642 = vmatprep.subr.bf16.mxu1 %v1487_v1  ;;  %v228_v1 = vld [vmem:[%s1608_s23 + $0xd8] sm:$0xff]  ;;  %v241_v29 = vld [vmem:[%s1608_s23 + $0x140] sm:$0xff]  ;;  %v291_v51 = vpack.c.bf16 %v255_v47, %v251_v46  ;;  %v263_v57 = vld [vmem:[%s1608_s23 + $0x1f0] sm:$0xff] }
  0x2a   : > { %v280_v4 = vpack.c.bf16 %v232_v2, %v228_v1  ;;  %v285_v33 = vpack.c.bf16 %v245_v30, %v241_v29  ;;  %v261_v54 = vld [vmem:[%s1608_s23 + $0x1e0] sm:$0xff] }
  0x2c   : > { %562 = vmatmul.mubr.bf16.vlgmr.msra.gmra.mrb[0].mxu0 %v265_v36  ;;  %643 = vmatpush1.bf16.msra.mxu1 %v527_v39  ;;  %v290_v36 = vpack.c.bf16 %v254_v32, %v250_v31  ;;  %v287_v39 = vpack.c.bf16 %v247_v35, %v243_v34 }
  0x2d   : > { %569 = vmatprep.mubr.bf16.mxu0 %v270_v40  ;;  %v292_v40 = vpack.c.bf16 %v256_v38, %v252_v37 }
  0x2f   : > { %659 = vmatmul.mubr.bf16.vlgmr.msra.gmra.mrb[0].mxu1 %v267_v43  ;;  %v258_v43 = vld [vmem:[%s1608_s23 + $0x1c8] sm:$0xff] }
  0x30   : > { %1129 = vmatprep.mubr.msk.bf16.mxu1 %vm500_vm0, %v272_v44  ;;  %v262_v44 = vld [vmem:[%s1608_s23 + $0x1e8] sm:$0xff] }
  0x31   : > { %v294_v48 = vpack.c.bf16 %v262_v44, %v258_v43 }
  0x34   : > { %570 = vmatmul.mubr.bf16.gmra.mrb[4].mxu0 %v269_v49  ;;  %v260_v49 = vld [vmem:[%s1608_s23 + $0x1d8] sm:$0xff] }
  0x35   : > { %577 = vmatprep.mubr.bf16.mxu0 %v274_v52  ;;  %v296_v52 = vpack.c.bf16 %v264_v50, %v260_v49 }
  0x37   : > { %667 = vmatmul.mubr.bf16.gmra.mrb[4].mxu1 %v271_v55  ;;  %v293_v55 = vpack.c.bf16 %v261_v54, %v257_v53 }
  0x38   : > { %1130 = vmatprep.mubr.msk.bf16.mxu1 %vm500_vm0, %v276_v56  ;;  %v259_v56 = vld [vmem:[%s1608_s23 + $0x1d0] sm:$0xff] }
  0x39   : > { %v295_v58 = vpack.c.bf16 %v263_v57, %v259_v56 }
  0x3c   : > { %578 = vmatmul.mubr.bf16.gmra.mrb[8].mxu0 %v273_v61  ;;  %v1706_v61 = vld [vmem:[%s1861_s2] ss:$0 sm:$0xff] }
  0x3d   : > { %585 = vmatprep.mubr.bf16.mxu0 %v278_v0 }
  0x3f   : > { %675 = vmatmul.mubr.bf16.gmra.mrb[8].mxu1 %v275_v3 }
  0x40   : > { %1131 = vmatprep.mubr.msk.bf16.mxu1 %vm500_vm0, %v280_v4 }
  0x44   : > { %586 = vmatmul.mubr.bf16.gmra.mrb[12].mxu0 %v277_v9 }
  0x45   : > { %593 = vmatprep.mubr.bf16.mxu0 %v282_v12 }
  0x47   : > { %683 = vmatmul.mubr.bf16.gmra.mrb[12].mxu1 %v279_v15 }
  0x48   : > { %1132 = vmatprep.mubr.msk.bf16.mxu1 %vm500_vm0, %v284_v16 }
  0x4c   : > { %594 = vmatmul.mubr.bf16.gmra.mrb[16].mxu0 %v281_v21 }
  0x4d   : > { %601 = vmatprep.mubr.bf16.mxu0 %v286_v24 }
  0x4f   : > { %691 = vmatmul.mubr.bf16.gmra.mrb[16].mxu1 %v283_v27 }
  0x50   : > { %1133 = vmatprep.mubr.msk.bf16.mxu1 %vm500_vm0, %v288_v28 }
  0x54   : > { %602 = vmatmul.mubr.bf16.gmra.mrb[20].mxu0 %v285_v33 }
  0x55   : > { %609 = vmatprep.mubr.bf16.mxu0 %v290_v36 }
  0x57   : > { %699 = vmatmul.mubr.bf16.gmra.mrb[20].mxu1 %v287_v39 }
  0x58   : > { %1134 = vmatprep.mubr.msk.bf16.mxu1 %vm500_vm0, %v292_v40 }
  0x5c   : > { %610 = vmatmul.mubr.bf16.gmra.mrb[24].mxu0 %v289_v45 }
  0x5d   : > { %617 = vmatprep.mubr.bf16.mxu0 %v294_v48 }
  0x5f   : > { %707 = vmatmul.mubr.bf16.gmra.mrb[24].mxu1 %v291_v51 }
  0x60   : > { %1135 = vmatprep.mubr.msk.bf16.mxu1 %vm500_vm0, %v296_v52 }
  0x64   : > { %618 = vmatmul.mubr.bf16.gmra.mrb[28].mxu0 %v293_v55 }
  0x67   : > { %715 = vmatmul.mubr.bf16.gmra.mrb[28].mxu1 %v295_v58 }
  0xff   : > { %v1173_v59 = vpop.f32.mrb[0].mxu0 }
 0x100   : > { %v1174_v60 = vpop.f32.mrb[1].mxu0 }
 0x101   : > { %v1175_v62 = vadd.f32 %v1174_v60, %v1173_v59  ;;  %v1176_v63 = vpop.f32.mrb[2].mxu0 }
 0x102   : > { %v1177_v0 = vpop.f32.mrb[3].mxu0  ;;  %v660_v1 = vpop.f32.mrb[0].mxu1 }
 0x103   : > { %v1178_v2 = vadd.f32 %v1177_v0, %v1176_v63  ;;  %v564_v3 = vadd.f32 %v1175_v62, %v1706_v61  ;;  %v662_v4 = vpop.f32.mrb[1].mxu1 }
 0x104   : > { %v663_v5 = vpop.f32.mrb[2].mxu1 }
 0x105   : > { %v661_v6 = vadd.f32 %v660_v1, %v564_v3  ;;  %v567_v7 = vadd.f32 %v1178_v2, %v1706_v61  ;;  %v665_v8 = vpop.f32.mrb[3].mxu1 }
 0x107   : > { %v723_v9 = vsub.f32 0.0, %v661_v6  ;;  %v664_v10 = vadd.f32 %v663_v5, %v567_v7  ;;  %v1179_v11 = vpop.f32.mrb[4].mxu0 }
 0x108   : > { %v1180_v12 = vpop.f32.mrb[5].mxu0 }
 0x109   : > { %v739_v13 = vmul.f32 1.442695, %v723_v9  ;;  %v724_v14 = vsub.f32 0.0, %v664_v10  ;;  %v1181_v15 = vadd.f32 %v1180_v12, %v1179_v11  ;;  %v1182_v16 = vpop.f32.mrb[6].mxu0 }
 0x10a   : > { %v1183_v17 = vpop.f32.mrb[7].mxu0  ;;  %v668_v18 = vpop.f32.mrb[4].mxu1 }
 0x10b   : > { %1335 = vpow2.f32 %v739_v13  ;;  %v741_v19 = vmul.f32 1.442695, %v724_v14  ;;  %v1184_v20 = vadd.f32 %v1183_v17, %v1182_v16  ;;  %v572_v21 = vadd.f32 %v1181_v15, %v1706_v61  ;;  %v670_v22 = vpop.f32.mrb[5].mxu1 }
 0x10c   : > { %v671_v23 = vpop.f32.mrb[6].mxu1 }
 0x10d   : > { %1337 = vpow2.f32 %v741_v19  ;;  %v669_v24 = vadd.f32 %v668_v18, %v572_v21  ;;  %v575_v25 = vadd.f32 %v1184_v20, %v1706_v61  ;;  %v673_v26 = vpop.f32.mrb[7].mxu1 }
 0x10f   : > { %v725_v27 = vsub.f32 0.0, %v669_v24  ;;  %v672_v28 = vadd.f32 %v671_v23, %v575_v25  ;;  %v1185_v29 = vpop.f32.mrb[8].mxu0 }
 0x110   : > { %v1186_v30 = vpop.f32.mrb[9].mxu0 }
 0x111   : > { %v743_v31 = vmul.f32 1.442695, %v725_v27  ;;  %v726_v32 = vsub.f32 0.0, %v672_v28  ;;  %v1187_v33 = vadd.f32 %v1186_v30, %v1185_v29  ;;  %v1188_v34 = vpop.f32.mrb[10].mxu0 }
 0x112   : > { %v1189_v35 = vpop.f32.mrb[11].mxu0  ;;  %v676_v36 = vpop.f32.mrb[8].mxu1 }
 0x113   : > { %1339 = vpow2.f32 %v743_v31  ;;  %v745_v37 = vmul.f32 1.442695, %v726_v32  ;;  %v1190_v38 = vadd.f32 %v1189_v35, %v1188_v34  ;;  %v580_v39 = vadd.f32 %v1187_v33, %v1706_v61  ;;  %v678_v40 = vpop.f32.mrb[9].mxu1 }
 0x114   : > { %v679_v41 = vpop.f32.mrb[10].mxu1 }
 0x115   : > { %v1336_v42 = vpop.eup %1335  ;;  %1341 = vpow2.f32 %v745_v37  ;;  %v677_v43 = vadd.f32 %v676_v36, %v580_v39  ;;  %v583_v44 = vadd.f32 %v1190_v38, %v1706_v61  ;;  %v681_v45 = vpop.f32.mrb[11].mxu1 }
 0x116   : > { %v771_v46 = vadd.f32 1.0, %v1336_v42 }
 0x117   : > { %v1338_v47 = vpop.eup %1337  ;;  %v727_v48 = vsub.f32 0.0, %v677_v43  ;;  %v680_v49 = vadd.f32 %v679_v41, %v583_v44  ;;  %v1191_v50 = vpop.f32.mrb[12].mxu0 }
 0x118   : > { %1343 = vrcp.f32 %v771_v46  ;;  %v772_v51 = vadd.f32 1.0, %v1338_v47  ;;  %v1192_v52 = vpop.f32.mrb[13].mxu0 }
 0x119   : > { %v747_v53 = vmul.f32 1.442695, %v727_v48  ;;  %v728_v54 = vsub.f32 0.0, %v680_v49  ;;  %v1193_v55 = vadd.f32 %v1192_v52, %v1191_v50  ;;  %v1194_v56 = vpop.f32.mrb[14].mxu0 }
 0x11a   : > { %1345 = vrcp.f32 %v772_v51  ;;  %v1195_v57 = vpop.f32.mrb[15].mxu0  ;;  %v684_v58 = vpop.f32.mrb[12].mxu1 }
 0x11b   : > { %1347 = vpow2.f32 %v747_v53  ;;  %v749_v59 = vmul.f32 1.442695, %v728_v54  ;;  %v1196_v60 = vadd.f32 %v1195_v57, %v1194_v56  ;;  %v588_v62 = vadd.f32 %v1193_v55, %v1706_v61  ;;  %v686_v63 = vpop.f32.mrb[13].mxu1 }
 0x11c   : > { %v687_v0 = vpop.f32.mrb[14].mxu1 }
 0x11d   : > { %v1340_v1 = vpop.eup %1339  ;;  %1349 = vpow2.f32 %v749_v59  ;;  %v685_v2 = vadd.f32 %v684_v58, %v588_v62  ;;  %v591_v3 = vadd.f32 %v1196_v60, %v1706_v61  ;;  %v689_v4 = vpop.f32.mrb[15].mxu1 }
 0x11e   : > { %v773_v5 = vadd.f32 1.0, %v1340_v1 }
 0x11f   : > { %v1342_v6 = vpop.eup %1341  ;;  %v729_v7 = vsub.f32 0.0, %v685_v2  ;;  %v688_v8 = vadd.f32 %v687_v0, %v591_v3  ;;  %v1197_v9 = vpop.f32.mrb[16].mxu0 }
 0x120   : > { %1351 = vrcp.f32 %v773_v5  ;;  %v774_v10 = vadd.f32 1.0, %v1342_v6  ;;  %v1198_v11 = vpop.f32.mrb[17].mxu0 }
 0x121   : > { %v751_v12 = vmul.f32 1.442695, %v729_v7  ;;  %v730_v13 = vsub.f32 0.0, %v688_v8  ;;  %v1199_v14 = vadd.f32 %v1198_v11, %v1197_v9  ;;  %v1200_v15 = vpop.f32.mrb[18].mxu0 }
 0x122   : > { %v1344_v16 = vpop.eup %1343  ;;  %1353 = vrcp.f32 %v774_v10  ;;  %v1201_v17 = vpop.f32.mrb[19].mxu0 }
 0x123   : > { %v692_v18 = vpop.f32.mrb[16].mxu1  ;;  %803 = vst.msk [vmem:[%s1717_s12] sm:$0xff] %vm500_vm0, %v1344_v16  ;;  %1355 = vpow2.f32 %v751_v12  ;;  %v753_v19 = vmul.f32 1.442695, %v730_v13  ;;  %v1202_v20 = vadd.f32 %v1201_v17, %v1200_v15  ;;  %v596_v21 = vadd.f32 %v1199_v14, %v1706_v61 }
 0x124   : > { %v694_v22 = vpop.f32.mrb[17].mxu1  ;;  %v1346_v23 = vpop.eup %1345 }
 0x125   : > { %v695_v24 = vpop.f32.mrb[18].mxu1  ;;  %v1348_v25 = vpop.eup %1347  ;;  %804 = vst.msk [vmem:[%s1717_s12 + $0x8] sm:$0xff] %vm500_vm0, %v1346_v23  ;;  %1357 = vpow2.f32 %v753_v19  ;;  %v693_v26 = vadd.f32 %v692_v18, %v596_v21  ;;  %v599_v27 = vadd.f32 %v1202_v20, %v1706_v61 }
 0x126   : > { %v697_v28 = vpop.f32.mrb[19].mxu1  ;;  %v775_v29 = vadd.f32 1.0, %v1348_v25 }
 0x127   : > { %v1350_v30 = vpop.eup %1349  ;;  %v731_v31 = vsub.f32 0.0, %v693_v26  ;;  %v696_v32 = vadd.f32 %v695_v24, %v599_v27  ;;  %v1203_v33 = vpop.f32.mrb[20].mxu0 }
 0x128   : > { %1359 = vrcp.f32 %v775_v29  ;;  %v776_v34 = vadd.f32 1.0, %v1350_v30  ;;  %v1204_v35 = vpop.f32.mrb[21].mxu0 }
 0x129   : > { %v755_v36 = vmul.f32 1.442695, %v731_v31  ;;  %v732_v37 = vsub.f32 0.0, %v696_v32  ;;  %v1205_v38 = vadd.f32 %v1204_v35, %v1203_v33  ;;  %v1206_v39 = vpop.f32.mrb[22].mxu0 }
 0x12a   : > { %v1352_v40 = vpop.eup %1351  ;;  %1361 = vrcp.f32 %v776_v34  ;;  %v1207_v41 = vpop.f32.mrb[23].mxu0 }
 0x12b   : > { %v700_v42 = vpop.f32.mrb[20].mxu1  ;;  %805 = vst.msk [vmem:[%s1717_s12 + $0x10] sm:$0xff] %vm500_vm0, %v1352_v40  ;;  %1363 = vpow2.f32 %v755_v36  ;;  %v757_v43 = vmul.f32 1.442695, %v732_v37  ;;  %v1208_v44 = vadd.f32 %v1207_v41, %v1206_v39  ;;  %v604_v45 = vadd.f32 %v1205_v38, %v1706_v61 }
 0x12c   : > { %v702_v46 = vpop.f32.mrb[21].mxu1  ;;  %v1354_v47 = vpop.eup %1353 }
 0x12d   : > { %v703_v48 = vpop.f32.mrb[22].mxu1  ;;  %v1356_v49 = vpop.eup %1355  ;;  %806 = vst.msk [vmem:[%s1717_s12 + $0x18] sm:$0xff] %vm500_vm0, %v1354_v47  ;;  %1365 = vpow2.f32 %v757_v43  ;;  %v701_v50 = vadd.f32 %v700_v42, %v604_v45  ;;  %v607_v51 = vadd.f32 %v1208_v44, %v1706_v61 }
 0x12e   : > { %v705_v52 = vpop.f32.mrb[23].mxu1  ;;  %v777_v53 = vadd.f32 1.0, %v1356_v49 }
 0x12f   : > { %v1358_v54 = vpop.eup %1357  ;;  %v733_v55 = vsub.f32 0.0, %v701_v50  ;;  %v704_v56 = vadd.f32 %v703_v48, %v607_v51  ;;  %v1209_v57 = vpop.f32.mrb[24].mxu0 }
 0x130   : > { %1367 = vrcp.f32 %v777_v53  ;;  %v778_v58 = vadd.f32 1.0, %v1358_v54  ;;  %v1210_v59 = vpop.f32.mrb[25].mxu0 }
 0x131   : > { %v759_v60 = vmul.f32 1.442695, %v733_v55  ;;  %v734_v62 = vsub.f32 0.0, %v704_v56  ;;  %v1211_v63 = vadd.f32 %v1210_v59, %v1209_v57  ;;  %v1212_v0 = vpop.f32.mrb[26].mxu0 }
 0x132   : > { %v1360_v1 = vpop.eup %1359  ;;  %1369 = vrcp.f32 %v778_v58  ;;  %v1213_v2 = vpop.f32.mrb[27].mxu0 }
 0x133   : > { %v708_v3 = vpop.f32.mrb[24].mxu1  ;;  %807 = vst.msk [vmem:[%s1717_s12 + $0x20] sm:$0xff] %vm500_vm0, %v1360_v1  ;;  %1371 = vpow2.f32 %v759_v60  ;;  %v761_v4 = vmul.f32 1.442695, %v734_v62  ;;  %v1214_v5 = vadd.f32 %v1213_v2, %v1212_v0  ;;  %v612_v6 = vadd.f32 %v1211_v63, %v1706_v61 }
 0x134   : > { %v710_v7 = vpop.f32.mrb[25].mxu1  ;;  %v1362_v8 = vpop.eup %1361 }
 0x135   : > { %v711_v9 = vpop.f32.mrb[26].mxu1  ;;  %v1364_v10 = vpop.eup %1363  ;;  %808 = vst.msk [vmem:[%s1717_s12 + $0x28] sm:$0xff] %vm500_vm0, %v1362_v8  ;;  %1373 = vpow2.f32 %v761_v4  ;;  %v709_v11 = vadd.f32 %v708_v3, %v612_v6  ;;  %v615_v12 = vadd.f32 %v1214_v5, %v1706_v61 }
 0x136   : > { %v713_v13 = vpop.f32.mrb[27].mxu1  ;;  %v779_v14 = vadd.f32 1.0, %v1364_v10 }
 0x137   : > { %v1366_v15 = vpop.eup %1365  ;;  %v735_v16 = vsub.f32 0.0, %v709_v11  ;;  %v712_v17 = vadd.f32 %v711_v9, %v615_v12  ;;  %v1215_v18 = vpop.f32.mrb[28].mxu0 }
 0x138   : > { %1375 = vrcp.f32 %v779_v14  ;;  %v780_v19 = vadd.f32 1.0, %v1366_v15  ;;  %v1216_v20 = vpop.f32.mrb[29].mxu0 }
 0x139   : > { %v763_v21 = vmul.f32 1.442695, %v735_v16  ;;  %v736_v22 = vsub.f32 0.0, %v712_v17  ;;  %v1217_v23 = vadd.f32 %v1216_v20, %v1215_v18  ;;  %v1218_v24 = vpop.f32.mrb[30].mxu0 }
 0x13a   : > { %v1368_v25 = vpop.eup %1367  ;;  %1377 = vrcp.f32 %v780_v19  ;;  %v1219_v26 = vpop.f32.mrb[31].mxu0 }
 0x13b   : > { %v716_v27 = vpop.f32.mrb[28].mxu1  ;;  %809 = vst.msk [vmem:[%s1717_s12 + $0x30] sm:$0xff] %vm500_vm0, %v1368_v25  ;;  %1379 = vpow2.f32 %v763_v21  ;;  %v765_v28 = vmul.f32 1.442695, %v736_v22  ;;  %v1220_v29 = vadd.f32 %v1219_v26, %v1218_v24  ;;  %v620_v30 = vadd.f32 %v1217_v23, %v1706_v61 }
 0x13c   : > { %v718_v31 = vpop.f32.mrb[29].mxu1  ;;  %v1370_v32 = vpop.eup %1369 }
 0x13d   : > { %v719_v33 = vpop.f32.mrb[30].mxu1  ;;  %v1372_v34 = vpop.eup %1371  ;;  %810 = vst.msk [vmem:[%s1717_s12 + $0x38] sm:$0xff] %vm500_vm0, %v1370_v32  ;;  %1381 = vpow2.f32 %v765_v28  ;;  %v717_v35 = vadd.f32 %v716_v27, %v620_v30  ;;  %v623_v36 = vadd.f32 %v1220_v29, %v1706_v61 }
 0x13e   : > { %v721_v37 = vpop.f32.mrb[31].mxu1  ;;  %v781_v38 = vadd.f32 1.0, %v1372_v34 }
 0x13f   : > { %v1374_v39 = vpop.eup %1373  ;;  %v737_v40 = vsub.f32 0.0, %v717_v35  ;;  %v720_v41 = vadd.f32 %v719_v33, %v623_v36 }
 0x140   : > { %1383 = vrcp.f32 %v781_v38  ;;  %v782_v42 = vadd.f32 1.0, %v1374_v39 }
 0x141   : > { %v767_v43 = vmul.f32 1.442695, %v737_v40  ;;  %v738_v44 = vsub.f32 0.0, %v720_v41 }
 0x142   : > { %v1376_v45 = vpop.eup %1375  ;;  %1385 = vrcp.f32 %v782_v42 }
 0x143   : > { %811 = vst.msk [vmem:[%s1717_s12 + $0x40] sm:$0xff] %vm500_vm0, %v1376_v45  ;;  %1387 = vpow2.f32 %v767_v43  ;;  %v769_v46 = vmul.f32 1.442695, %v738_v44 }
 0x144   : > { %v1378_v47 = vpop.eup %1377 }
 0x145   : > { %v1380_v61 = vpop.eup %1379  ;;  %812 = vst.msk [vmem:[%s1717_s12 + $0x48] sm:$0xff] %vm500_vm0, %v1378_v47  ;;  %1389 = vpow2.f32 %v769_v46 }
 0x146   : > { %v783_v48 = vadd.f32 1.0, %v1380_v61 }
 0x147   : > { %v1382_v49 = vpop.eup %1381 }
 0x148   : > { %1391 = vrcp.f32 %v783_v48  ;;  %v784_v50 = vadd.f32 1.0, %v1382_v49 }
 0x14a   : > { %v1384_v51 = vpop.eup %1383  ;;  %1393 = vrcp.f32 %v784_v50 }
 0x14b   : > { %813 = vst.msk [vmem:[%s1717_s12 + $0x50] sm:$0xff] %vm500_vm0, %v1384_v51 }
 0x14c   : > { %v1386_v52 = vpop.eup %1385 }
 0x14d   : > { %v1388_v53 = vpop.eup %1387  ;;  %814 = vst.msk [vmem:[%s1717_s12 + $0x58] sm:$0xff] %vm500_vm0, %v1386_v52 }
 0x14e   : > { %v785_v54 = vadd.f32 1.0, %v1388_v53 }
 0x14f   : > { %v1390_v55 = vpop.eup %1389 }
 0x150   : > { %1395 = vrcp.f32 %v785_v54  ;;  %v786_v56 = vadd.f32 1.0, %v1390_v55 }
 0x152   : > { %v1392_v57 = vpop.eup %1391  ;;  %1397 = vrcp.f32 %v786_v56 }
 0x153   : > { %815 = vst.msk [vmem:[%s1717_s12 + $0x60] sm:$0xff] %vm500_vm0, %v1392_v57 }
 0x154   : > { %v1394_v58 = vpop.eup %1393 }
 0x155   : > { %816 = vst.msk [vmem:[%s1717_s12 + $0x68] sm:$0xff] %vm500_vm0, %v1394_v58 }
 0x157   : > { %825 = sbr.rel (!%p1533_p4) target bundleno = 399 (0x18f), region = 36 }
 0x15a   : > { %v1396_v59 = vpop.eup %1395 }
 0x15b   : > { %817 = vst.msk [vmem:[%s1717_s12 + $0x70] sm:$0xff] %vm500_vm0, %v1396_v59 }
 0x15c   : > { %v1398_v60 = vpop.eup %1397 }
 0x15d   : > { %818 = vst.msk [vmem:[%s1717_s12 + $0x78] sm:$0xff] %vm500_vm0, %v1398_v60 }
 0x15e   : > { %s1871_s18 = smov (!%p828_p8, %s827_s18), 16 }
 0x15f   : > { %s1138_s25 = sshll.u32 %s1871_s18, 7 }
 0x160   : > { %p1141_p9 = scmp.eq.s32.totalorder %s1138_s25, 0 }
 0x161   : > { %s1772_s26 = sshrl.u32 (!%p1141_p9), %s1871_s18, 4 }
 0x162   : > { %836 = sbr.rel (%p1141_p9) target bundleno = 399 (0x18f), region = 40  ;;  %p1142_p10 = scmp.le.s32.totalorder (!%p1141_p9), %s1772_s26, 0 }
 0x169   : > { %1050 = sbr.rel (%p1142_p10) target bundleno = 378 (0x17a), region = 116  ;;  %s1864_s15 = smov (!%p1142_p10), %s1766_s24 }
 0x16a   : > { %s1865_s20 = smov (!%p1142_p10), %s1717_s12  ;;  %s1781_s10 = smov (!%p1142_p10), 0  }
 0x16b   : > { %s1783_s27 = smov (!%p1142_p10), 0  }
 0x170 LB: >> { %v928_v62 = vld [vmem:[%s1461_s20] sm:$0xff]  ;;  %v930_v63 = vld [vmem:[%s1461_s20 + $0x8] sm:$0xff]  ;;  %v932_v0 = vld [vmem:[%s1461_s20 + $0x10] sm:$0xff]  ;;  %s960_s28 = sadd.s32 1, %s1465_s10  ;;  %s922_s27 = sadd.s32 1, %s1469_s27   ;;  %s1469_s27 = sphi %s1783_s27, %s922_s27   ;;  %s1465_s10 = sphi %s1781_s10, %s1866_s10   ;;  %s1461_s20 = sphi %s1865_s20, %s965_s20   ;;  %s1457_s15 = sphi %s1864_s15, %s966_s15  }
 0x171   : >> { %929 = vst [vmem:[%s1457_s15] sm:$0xff] %v928_v62  ;;  %931 = vst [vmem:[%s1457_s15 + $0x8] sm:$0xff] %v930_v63  ;;  %v934_v1 = vld [vmem:[%s1461_s20 + $0x18] sm:$0xff]  ;;  %v936_v2 = vld [vmem:[%s1461_s20 + $0x20] sm:$0xff]  ;;  %p961_p11 = scmp.ge.s32.totalorder %s960_s28, %s1772_s26  ;;  %p921_p12 = scmp.ge.s32.totalorder %s922_s27, %s1772_s26 }
 0x172   : >> { %933 = vst [vmem:[%s1457_s15 + $0x10] sm:$0xff] %v932_v0  ;;  %v938_v3 = vld [vmem:[%s1461_s20 + $0x28] sm:$0xff]  ;;  %935 = vst [vmem:[%s1457_s15 + $0x18] sm:$0xff] %v934_v1  ;;  %v940_v4 = vld [vmem:[%s1461_s20 + $0x30] sm:$0xff] }
 0x173   : >> { %937 = vst [vmem:[%s1457_s15 + $0x20] sm:$0xff] %v936_v2  ;;  %939 = vst [vmem:[%s1457_s15 + $0x28] sm:$0xff] %v938_v3  ;;  %v942_v5 = vld [vmem:[%s1461_s20 + $0x38] sm:$0xff]  ;;  %v944_v6 = vld [vmem:[%s1461_s20 + $0x40] sm:$0xff]  ;;  %s1873_s28 = smov (%p961_p11, %s960_s28), 0  ;;  %924 = sbr.rel (!%p921_p12) target bundleno = 368 (0x170), region = 122 }
 0x174   : >> { %941 = vst [vmem:[%s1457_s15 + $0x30] sm:$0xff] %v940_v4  ;;  %943 = vst [vmem:[%s1457_s15 + $0x38] sm:$0xff] %v942_v5  ;;  %v946_v7 = vld [vmem:[%s1461_s20 + $0x48] sm:$0xff]  ;;  %v948_v8 = vld [vmem:[%s1461_s20 + $0x50] sm:$0xff]  ;;  %s1143_s29 = sshll.u32 %s1873_s28, 7  ;;  %s1866_s10 = smov %s1873_s28 }
 0x175   : >> { %945 = vst [vmem:[%s1457_s15 + $0x40] sm:$0xff] %v944_v6  ;;  %v950_v9 = vld [vmem:[%s1461_s20 + $0x58] sm:$0xff]  ;;  %947 = vst [vmem:[%s1457_s15 + $0x48] sm:$0xff] %v946_v7  ;;  %v952_v10 = vld [vmem:[%s1461_s20 + $0x60] sm:$0xff] }
 0x176   : >> { %949 = vst [vmem:[%s1457_s15 + $0x50] sm:$0xff] %v948_v8  ;;  %951 = vst [vmem:[%s1457_s15 + $0x58] sm:$0xff] %v950_v9  ;;  %v954_v11 = vld [vmem:[%s1461_s20 + $0x68] sm:$0xff]  ;;  %v956_v12 = vld [vmem:[%s1461_s20 + $0x70] sm:$0xff] }
 0x177   : >> { %953 = vst [vmem:[%s1457_s15 + $0x60] sm:$0xff] %v952_v10  ;;  %955 = vst [vmem:[%s1457_s15 + $0x68] sm:$0xff] %v954_v11  ;;  %v958_v13 = vld [vmem:[%s1461_s20 + $0x78] sm:$0xff]  ;;  %s965_s20 = scalar_lea.vmem %s1717_s12, %s1143_s29 [#allocation2]  }
 0x178   : >> { %957 = vst [vmem:[%s1457_s15 + $0x70] sm:$0xff] %v956_v12  ;;  %959 = vst [vmem:[%s1457_s15 + $0x78] sm:$0xff] %v958_v13  ;;  %s966_s15 = scalar_lea.vmem %s1766_s24, %s1143_s29  }
 0x17a PF: > { %s1841_s30 = sand.u32 15, %s1871_s18   ;;  %s1155_s4 = sshll.u32 %s1772_s26, 7 }
 0x17b   : > { %s971_s5 = scalar_lea.vmem %s1717_s12, %s1155_s4 [#allocation2]   ;;  %s973_s6 = scalar_lea.vmem %s1766_s24, %s1155_s4  }
 0x17c   : > { %p1148_p13 = scmp.le.s32.totalorder %s1841_s30, 0 }
 0x17d   : > { %s1471_s7 = smov (!%p1148_p13), %s973_s6   ;;  %s1475_s8 = smov (!%p1148_p13), %s971_s5  }
 0x17e   : > { %1064 = sbr.rel (%p1148_p13) target bundleno = 399 (0x18f), region = 127  ;;  %s1479_s9 = smov (!%p1148_p13), 0  }
 0x17f   : > { %s1483_s11 = smov (!%p1148_p13), 0  }
 0x185 LB: >> { %v983_v14 = vld [vmem:[%s1477_s8] sm:$0xff]  ;;  %s985_s14 = sadd.s32 1, %s1481_s9  ;;  %s977_s11 = sadd.s32 1, %s1485_s11   ;;  %s1485_s11 = sphi %s1483_s11, %s977_s11   ;;  %s1481_s9 = sphi %s1479_s9, %s1480_s9   ;;  %s1477_s8 = sphi %s1475_s8, %s990_s8   ;;  %s1473_s7 = sphi %s1471_s7, %s991_s7  }
 0x186   : >> { %984 = vst [vmem:[%s1473_s7] sm:$0xff] %v983_v14  ;;  %p986_p0 = scmp.ge.s32.totalorder %s985_s14, %s1841_s30  ;;  %p976_p1 = scmp.ge.s32.totalorder %s977_s11, %s1841_s30 }
 0x188   : >> { %s1875_s14 = smov (%p986_p0, %s985_s14), 0  ;;  %979 = sbr.rel (!%p976_p1) target bundleno = 389 (0x185), region = 133 }
 0x189   : >> { %s1149_s17 = sshll.u32 %s1875_s14, 3  ;;  %s1480_s9 = smov %s1875_s14  }
 0x18a   : >> { %s990_s8 = scalar_lea.vmem %s971_s5, %s1149_s17 [#allocation2]   ;;  %s991_s7 = scalar_lea.vmem %s973_s6, %s1149_s17  }
 0x18f PF: > { %p10_p2 = scmp.ge.s32.totalorder %s1523_s16, 5   ;;  %s1867_s12 = smov %s1449_s13 }
 0x190   : > { %s1868_s13 = smov %s1531_s19  ;;  %s1869_s14 = smov %s1523_s16 }
 0x191   :  { %12 = sbr.rel (!%p10_p2) target bundleno = 2 (0x2), region = 144 }

</bundles_post_ra>
